<compile_context>
chip_gen: v7x
topology: tpu7x:2x2x1
jax: 0.10.0
libtpu: 0.0.40
codegen_flags: <defaults>
</compile_context>

<pallas_src>
import functools

import jax
import jax.numpy as jnp
from jax.experimental import pallas as pl
from jax.experimental.pallas import tpu as pltpu


def _hash_bits(shape, seed_u32, tile_u32):
    """Stateless per-element 32-bit hash using only jnp integer ops.

    Works on TPU (VPU integer ops) and in interpret mode; avoids the
    TPU-only stateful PRNG primitives that failed to lower.
    """
    rows = jax.lax.broadcasted_iota(jnp.int32, shape, 0).astype(jnp.uint32)
    cols = jax.lax.broadcasted_iota(jnp.int32, shape, 1).astype(jnp.uint32)
    h = rows * jnp.uint32(0x9E3779B1) ^ cols * jnp.uint32(0x85EBCA77)
    h = h ^ (seed_u32 * jnp.uint32(0xC2B2AE3D) + tile_u32 * jnp.uint32(0x27D4EB2F))
    # lowbias32-style finalizer (wrapping uint32 arithmetic).
    h = h ^ (h >> 16)
    h = h * jnp.uint32(0x7FEB352D)
    h = h ^ (h >> 15)
    h = h * jnp.uint32(0x846CA68B)
    h = h ^ (h >> 16)
    return h


def encoder_kernel(seed_ref, x_ref, wt_ref, b_ref, o_ref, *, dropout_rate, training):
    """seed_ref: SMEM (1,) i32; x_ref: (TM, NQ) f32; wt_ref: (NQ, K1) bf16;
    b_ref: (1, K1) f32; o_ref: (TM, K1) f32."""
    x = x_ref[...].astype(jnp.float32)

    if training and dropout_rate > 0.0:
        # Inverted dropout: keep with prob (1-p), scale kept values by 1/(1-p).
        seed_u32 = seed_ref[0].astype(jnp.uint32)
        tile_u32 = pl.program_id(0).astype(jnp.uint32)  # distinct mask per tile
        bits = _hash_bits(x.shape, seed_u32, tile_u32)
        # Top 24 hash bits -> uniform integer in [0, 2^24); compare against an
        # integer threshold (no uint->float convert on the VPU path).
        r24 = (bits >> 8).astype(jnp.int32)
        threshold = jnp.int32(int(round(dropout_rate * float(1 << 24))))
        keep = r24 >= threshold                       # P(keep) = 1 - p
        scale = jnp.float32(1.0 / (1.0 - dropout_rate))
        x = jnp.where(keep, x * scale, jnp.float32(0.0))
    # else: eval mode -> dropout is the identity.

    z = jnp.dot(x.astype(wt_ref.dtype), wt_ref[...],
                preferred_element_type=jnp.float32) + b_ref[...]
    o_ref[...] = jax.nn.sigmoid(z).astype(o_ref.dtype)


def prepare_encoder_params(weight, bias, *, compute_dtype=jnp.bfloat16):
    """One-time parameter prep (outside the hot path).

    weight: (k_1, num_question) -> W^T (num_question, k_1) in compute_dtype.
    bias:   (k_1,)              -> (1, k_1) f32 row.
    """
    wt = jnp.asarray(weight).T.astype(compute_dtype)
    b2 = jnp.asarray(bias, jnp.float32).reshape(1, -1)
    return wt, b2


def encoder_forward(x, wt, b2, *, dropout_rate=0.0, training=False, seed=0,
                    block_m=256):
    """x: (B, num_question) f32; wt: (num_question, k_1); b2: (1, k_1)."""
    B, NQ = x.shape
    K1 = wt.shape[1]
    # Batch tile: full batch for small B, otherwise a large multiple-of-8 tile
    # so Pallas can double-buffer the x/out DMAs behind the MXU.
    tm = B if B <= block_m else block_m
    grid = (pl.cdiv(B, tm),)
    seed_arr = jnp.asarray([seed], dtype=jnp.int32)

    kernel = functools.partial(
        encoder_kernel, dropout_rate=float(dropout_rate), training=bool(training)
    )

    return pl.pallas_call(
        kernel,
        out_shape=jax.ShapeDtypeStruct((B, K1), jnp.float32),
        grid=grid,
        in_specs=[
            pl.BlockSpec(memory_space=pltpu.MemorySpace.SMEM),   # seed scalar
            pl.BlockSpec((tm, NQ), lambda i: (i, 0)),            # x tile (pipelined)
            pl.BlockSpec((NQ, K1), lambda i: (0, 0)),            # W^T (resident)
            pl.BlockSpec((1, K1), lambda i: (0, 0)),             # bias row (resident)
        ],
        out_specs=pl.BlockSpec((tm, K1), lambda i: (i, 0)),
        compiler_params=pltpu.CompilerParams(
            dimension_semantics=("parallel",)),
    )(seed_arr, x, wt, b2)


def init_encoder_params(key, num_question, k_1):
    """nn.Linear default init: U(-1/sqrt(fan_in), 1/sqrt(fan_in))."""
    kw, kb = jax.random.split(key)
    bound = 1.0 / jnp.sqrt(jnp.float32(num_question))
    weight = jax.random.uniform(kw, (k_1, num_question), jnp.float32, -bound, bound)
    bias = jax.random.uniform(kb, (k_1,), jnp.float32, -bound, bound)
    return weight, bias


if __name__ == "__main__":
    # Small shapes consistent with the module: batch=8, num_question=256, k_1=128.
    B, NQ, K1 = 8, 256, 128
    dropout_rate = 0.25

    key = jax.random.PRNGKey(0)
    kx, kp = jax.random.split(key)
    x = jax.random.normal(kx, (B, NQ), jnp.float32)
    weight, bias = init_encoder_params(kp, NQ, K1)

    # One-time prep: transpose + bf16 downcast outside the hot path.
    wt, b2 = prepare_encoder_params(weight, bias)

    # Eval-mode forward (dropout = identity), matching Encoder.eval() semantics.
    out = encoder_forward(x, wt, b2, dropout_rate=dropout_rate, training=False)
    out = jax.block_until_ready(out)

    # Reference with the same bf16 matmul operands as the kernel.
    ref_bf16 = jax.nn.sigmoid(
        jnp.dot(x.astype(jnp.bfloat16), wt, preferred_element_type=jnp.float32) + b2
    )
    # Full-f32 reference (loose tolerance only accounts for bf16 operands).
    ref_f32 = jax.nn.sigmoid(x @ weight.T + bias)

    assert out.shape == (B, K1)
    assert jnp.allclose(out, ref_bf16, atol=1e-4, rtol=1e-4)
    assert jnp.allclose(out, ref_f32, atol=2e-2)

    # Training-mode forward exercises the in-kernel (hash-based) dropout path.
    out_train = encoder_forward(
        x, wt, b2, dropout_rate=dropout_rate, training=True, seed=1234
    )
    out_train = jax.block_until_ready(out_train)
    assert out_train.shape == (B, K1)
    assert bool(jnp.all(jnp.isfinite(out_train)))
    assert bool(jnp.all((out_train >= 0.0) & (out_train <= 1.0)))

    print("KERNEL_OK")
</pallas_src>

<mosaic_0001>
module attributes {stable_mosaic.version = 11 : i64} {
  func.func @encoder_kernel(%arg0: i32, %arg1: memref<1xi32, #tpu.memory_space<smem>>, %arg2: memref<8x256xf32, #tpu.memory_space<vmem>>, %arg3: memref<256x128xbf16, #tpu.memory_space<vmem>>, %arg4: memref<1x128xf32, #tpu.memory_space<vmem>>, %arg5: memref<8x128xf32, #tpu.memory_space<vmem>>) attributes {dimension_semantics = [#tpu.dimension_semantics<parallel>], iteration_bounds = array<i64: 1>, scalar_prefetch = 0 : i64, scratch_operands = 0 : i64, tpu.core_type = #tpu.core_type<tc>, window_params = [{transform_indices = @transform_0, window_bounds = array<i64: 1>}, {transform_indices = @transform_1, window_bounds = array<i64: 8, 256>}, {pipeline_mode = #tpu.pipeline_mode<synchronous>, transform_indices = @transform_2, window_bounds = array<i64: 256, 128>}, {pipeline_mode = #tpu.pipeline_mode<synchronous>, transform_indices = @transform_3, window_bounds = array<i64: 1, 128>}, {transform_indices = @transform_4, window_bounds = array<i64: 8, 128>}]} {
    %c0 = arith.constant 0 : index
    %c0_0 = arith.constant 0 : index
    %0 = vector.load %arg2[%c0, %c0_0] : memref<8x256xf32, #tpu.memory_space<vmem>>, vector<8x256xf32>
    %1 = arith.truncf %0 : vector<8x256xf32> to vector<8x256xbf16>
    %c0_1 = arith.constant 0 : index
    %c0_2 = arith.constant 0 : index
    %2 = vector.load %arg3[%c0_1, %c0_2] : memref<256x128xbf16, #tpu.memory_space<vmem>>, vector<256x128xbf16>
    %cst = arith.constant dense<0.000000e+00> : vector<8x128xf32>
    %3 = tpu.matmul %1, %2, %cst {dimension_numbers = #tpu.dot_dimension_numbers<[1], [0], [0], [1], [0, 0, 1, 1], [], []>} : vector<8x256xbf16>, vector<256x128xbf16>, vector<8x128xf32> -> vector<8x128xf32>
    %c0_3 = arith.constant 0 : index
    %c0_4 = arith.constant 0 : index
    %4 = vector.load %arg4[%c0_3, %c0_4] : memref<1x128xf32, #tpu.memory_space<vmem>>, vector<1x128xf32>
    %5 = vector.broadcast %4 : vector<1x128xf32> to vector<8x128xf32>
    %6 = arith.addf %3, %5 : vector<8x128xf32>
    %7 = arith.negf %6 : vector<8x128xf32>
    %8 = math.exp %7 : vector<8x128xf32>
    %cst_5 = arith.constant 1.000000e+00 : f32
    %9 = vector.broadcast %cst_5 : f32 to vector<8x128xf32>
    %10 = arith.addf %9, %8 : vector<8x128xf32>
    %11 = arith.divf %9, %10 : vector<8x128xf32>
    %c0_6 = arith.constant 0 : index
    %c0_7 = arith.constant 0 : index
    %12 = vector.load %arg5[%c0_6, %c0_7] : memref<8x128xf32, #tpu.memory_space<vmem>>, vector<8x128xf32>
    tpu.vector_store %arg5[%c0_6, %c0_7], %11 {strides = array<i32>} : memref<8x128xf32, #tpu.memory_space<vmem>>, vector<8x128xf32>,
    return
  }
  func.func @transform_0(%arg0: i32) -> i32 {
    %c0_i32 = arith.constant 0 : i32
    %c0_i32_0 = arith.constant 0 : i32
    return %c0_i32 : i32
  }
  func.func @transform_1(%arg0: i32) -> (i32, i32) {
    %c0_i32 = arith.constant 0 : i32
    %c0_i32_0 = arith.constant 0 : i32
    return %arg0, %c0_i32 : i32, i32
  }
  func.func @transform_2(%arg0: i32) -> (i32, i32) {
    %c0_i32 = arith.constant 0 : i32
    %c0_i32_0 = arith.constant 0 : i32
    %c0_i32_1 = arith.constant 0 : i32
    return %c0_i32, %c0_i32_0 : i32, i32
  }
  func.func @transform_3(%arg0: i32) -> (i32, i32) {
    %c0_i32 = arith.constant 0 : i32
    %c0_i32_0 = arith.constant 0 : i32
    %c0_i32_1 = arith.constant 0 : i32
    return %c0_i32, %c0_i32_0 : i32, i32
  }
  func.func @transform_4(%arg0: i32) -> (i32, i32) {
    %c0_i32 = arith.constant 0 : i32
    %c0_i32_0 = arith.constant 0 : i32
    return %arg0, %c0_i32 : i32, i32
  }
}

</mosaic_0001>

<bundles_post_ra>
// kernel: tpu_custom_call.1
= control target key start
LH: loop header
LB: loop body
LE: loop exit
PB: predicated region body
PF: predicated region fallthrough
CT: control target
= control target key end

     0   :  { %10 = vsyncpa [#allocation4], 0  ;;  %s461_s0 = inlined_call_operand.<no memory space> [shape: s32[1], index: 0, kind: input, shape index: {}]   ;;  %s462_s1 = inlined_call_operand.hbm [shape: f32[8,256], index: 1, kind: input, shape index: {}]   ;;  %s463_s2 = inlined_call_operand.hbm [shape: bf16[256,128], index: 2, kind: input, shape index: {}]   ;;  %s464_s3 = inlined_call_operand.vmem [shape: f32[1,128], index: 3, kind: input, shape index: {}]   ;;  %s465_s4 = inlined_call_operand.hbm [shape: f32[8,128], index: 4, kind: output, shape index: {}]  }
   0x1   :  { %11 = vsyncpa [#allocation7], 0 }
   0x2   :  { %12 = vsyncpa [#allocation5], 0  ;;  %s385_s15 = smov [#allocation3]   ;;  %s386_s17 = smov [#allocation6]  }
   0x3   :  { %s21_s16 = sshll.u32 %s385_s15, 4  ;;  %s30_s18 = sshll.u32 %s386_s17, 4  ;;  %s22_s16 = int_to_ptr.vmem [resolvable:$true] %s21_s16  ;;  %s415_s18 = int_to_ptr.vmem [resolvable:$true] %s30_s18 }
   0x4   :  { %s313_s20 = scalar_lea.hbm %s462_s1, 256 }
   0x5   :  { %p314_p0 = scmp.ne.s32.totalorder %s462_s1, %s313_s20  ;;  %p317_p1 = scmp.lt.u32.totalorder %s313_s20, %s462_s1 }
   0x7   :  { %p319_p2 = pnand %p317_p1, %p314_p0 }
   0x9   :  { %322 = shalt.err (!%p319_p2)
}
   0xa   :  { %s323_s25 = scalar_lea.vmem %s22_s16, 256  ;;  %p328_p4 = scmp.lt.s32.totalorder %s22_s16, %s22_s16 }
   0xb   :  { %p324_p3 = scmp.ne.s32.totalorder %s22_s16, %s323_s25  ;;  %p329_p5 = scmp.lt.s32.totalorder %s323_s25, %s323_s25 }
   0xd   :  { %p330_p6 = por %p329_p5, %p328_p4 }
   0xf   :  { %p331_p7 = pnand %p330_p6, %p324_p3 }
  0x11   :  { %334 = shalt.err (!%p331_p7)
}
  0x12   :  { %24 = dma.hbm_to_vmem [thread:$0]  %s462_s1, 256, %s22_s16, [#allocation4]  }
  0x13   :  { %s335_s30 = scalar_lea.hbm %s463_s2, 2048 }
  0x14   :  { %p336_p8 = scmp.ne.s32.totalorder %s463_s2, %s335_s30  ;;  %p339_p9 = scmp.lt.u32.totalorder %s335_s30, %s463_s2 }
  0x16   :  { %p341_p10 = pnand %p339_p9, %p336_p8 }
  0x18   :  { %344 = shalt.err (!%p341_p10)
}
  0x19   :  { %s345_s9 = scalar_lea.vmem %s415_s18, 2048  ;;  %p350_p12 = scmp.lt.s32.totalorder %s415_s18, %s415_s18 }
  0x1a   :  { %p346_p11 = scmp.ne.s32.totalorder %s415_s18, %s345_s9  ;;  %p351_p13 = scmp.lt.s32.totalorder %s345_s9, %s345_s9 }
  0x1c   :  { %p352_p0 = por %p351_p13, %p350_p12 }
  0x1e   :  { %p353_p1 = pnand %p352_p0, %p346_p11 }
  0x20   :  { %356 = shalt.err (!%p353_p1)
}
  0x21   :  { %s387_s1 = smov 64   ;;  %s388_s10 = smov 4  }
  0x22   :  { %36 = dma.hbm_to_vmem [thread:$0]  %s463_s2, 2048, %s415_s18, [#allocation7], %s387_s1, %s387_s1, %s388_s10  }
  0x23   :  { %379 = dma.done.wait [#allocation4], 256  }
  0x24   :  { %380 = vsyncadd [#allocation4], 4294967040 }
  0x25   :  { %381 = dma.done.wait [#allocation7], 2048  }
  0x26   :  { %382 = vsyncadd [#allocation7], 4294965248  ;;  %v293_v0 = vld [vmem:[#allocation6 + $0x40] sm:$0xff]   ;;  %v295_v2 = vld [vmem:[#allocation6 + $0x48] sm:$0xff]   ;;  %s389_s14 = smov [#allocation8]  }
  0x27   :  { %v294_v1 = vld [vmem:[#allocation6] sm:$0xff]   ;;  %266 = vmatprep.subr.bf16.mxu0 %v293_v0  ;;  %v296_v3 = vld [vmem:[#allocation6 + $0x8] sm:$0xff]   ;;  %v297_v4 = vld [vmem:[#allocation6 + $0x50] sm:$0xff]   ;;  %s238_s15 = sshll.u32 %s389_s14, 4  ;;  %s239_s15 = int_to_ptr.vmem [resolvable:$true] %s238_s15 }
  0x28   :  { %267 = vmatpush3.bf16.msra.mxu0 %v294_v1  ;;  %v298_v5 = vld [vmem:[#allocation6 + $0x10] sm:$0xff]   ;;  %v299_v6 = vld [vmem:[#allocation6 + $0x58] sm:$0xff]   ;;  %v301_v8 = vld [vmem:[#allocation6 + $0x60] sm:$0xff]   ;;  %s357_s16 = scalar_lea.vmem %s239_s15, 128  ;;  %p362_p3 = scmp.lt.s32.totalorder %s239_s15, %s239_s15 }
  0x29   :  { %268 = vmatprep.subr.bf16.mxu0 %v295_v2  ;;  %v300_v7 = vld [vmem:[#allocation6 + $0x18] sm:$0xff]   ;;  %v302_v9 = vld [vmem:[#allocation6 + $0x20] sm:$0xff]   ;;  %v303_v10 = vld [vmem:[#allocation6 + $0x68] sm:$0xff]   ;;  %p358_p2 = scmp.ne.s32.totalorder %s239_s15, %s357_s16  ;;  %p363_p4 = scmp.lt.s32.totalorder %s357_s16, %s357_s16 }
  0x2a   :  { %v47_v11 = vld [vmem:[#allocation3 + $0x8] sm:$0xff]  ;;  %v304_v13 = vld [vmem:[#allocation6 + $0x28] sm:$0xff]   ;;  %v305_v14 = vld [vmem:[#allocation6 + $0x70] sm:$0xff]  }
  0x2b   :  { %v49_v12 = vpack.c.bf16 %v47_v11, %v47_v11  ;;  %v306_v15 = vld [vmem:[#allocation6 + $0x30] sm:$0xff]   ;;  %v307_v16 = vld [vmem:[#allocation6 + $0x78] sm:$0xff]   ;;  %p364_p5 = por %p363_p4, %p362_p3 }
  0x2c   :  { %269 = vmatpush3.bf16.msra.mxu0 %v296_v3  ;;  %v308_v17 = vld [vmem:[#allocation6 + $0x38] sm:$0xff]   ;;  %v46_v18 = vld [vmem:[#allocation3] sm:$0xff] }
  0x2d   :  { %270 = vmatprep.subr.bf16.mxu0 %v297_v4  ;;  %217 = vmatprep.mubr.bf16.mxu0 %v49_v12  ;;  %v48_v19 = vpack.c.bf16 %v46_v18, %v46_v18  ;;  %v248_v21 = vld [vmem:[%s464_s3] ss:$0 sm:$0xff]  ;;  %p365_p6 = pnand %p364_p5, %p358_p2 }
  0x30   :  { %271 = vmatpush3.bf16.msra.mxu0 %v298_v5 }
  0x31   :  { %272 = vmatprep.subr.bf16.mxu0 %v299_v6 }
  0x34   :  { %273 = vmatpush3.bf16.msra.mxu0 %v300_v7 }
  0x35   :  { %274 = vmatprep.subr.bf16.mxu0 %v301_v8 }
  0x38   :  { %275 = vmatpush3.bf16.msra.mxu0 %v302_v9 }
  0x39   :  { %276 = vmatprep.subr.bf16.mxu0 %v303_v10 }
  0x3c   :  { %277 = vmatpush3.bf16.msra.mxu0 %v304_v13 }
  0x3d   :  { %278 = vmatprep.subr.bf16.mxu0 %v305_v14 }
  0x40   :  { %279 = vmatpush3.bf16.msra.mxu0 %v306_v15 }
  0x41   :  { %280 = vmatprep.subr.bf16.mxu0 %v307_v16 }
  0x44   :  { %281 = vmatpush3.bf16.msra.mxu0 %v308_v17 }
  0x47   :  { %218 = vmatmul.mubr.bf16.vlgmr.msra.gmra.mrb[0].mxu0 %v48_v19 }
 0x11a   :  { %v282_v20 = vpop.f32.mrb[0].mxu0 }
 0x11b   :  { %v283_v22 = vpop.f32.mrb[1].mxu0 }
 0x11c   :  { %v284_v23 = vadd.f32 %v283_v22, %v282_v20  ;;  %v285_v24 = vpop.f32.mrb[2].mxu0 }
 0x11d   :  { %v286_v25 = vpop.f32.mrb[3].mxu0 }
 0x11e   :  { %v220_v26 = vadd.f32 %v284_v23, %v248_v21 }
 0x120   :  { %v265_v27 = vmul.f32 -1.442695, %v220_v26 }
 0x122   :  { %309 = vpow2.f32 %v265_v27 }
 0x12c   :  { %v310_v28 = vpop.eup %309 }
 0x12d   :  { %v228_v29 = vadd.f32 1.0, %v310_v28 }
 0x12f   :  { %311 = vrcp.f32 %v228_v29 }
 0x139   :  { %v312_v30 = vpop.eup %311 }
 0x13a   :  { %231 = vst [vmem:[#allocation8] sm:$0xff] %v312_v30 }
 0x13b   :  { %368 = shalt.err (!%p365_p6)
}
 0x13c   :  { %s369_s18 = scalar_lea.hbm %s465_s4, 128 }
 0x13d   :  { %p370_p7 = scmp.ne.s32.totalorder %s465_s4, %s369_s18  ;;  %p373_p8 = scmp.lt.u32.totalorder %s369_s18, %s465_s4 }
 0x13f   :  { %p375_p9 = pnand %p373_p8, %p370_p7 }
 0x141   :  { %378 = shalt.err (!%p375_p9)
}
 0x142   :  { %241 = dma.vmem_to_hbm [thread:$0]  %s239_s15, 128, %s465_s4, [#allocation5]  }
 0x143   :  { %383 = dma.done.wait [#allocation5], 128  }
 0x144   :  { %384 = vsyncadd [#allocation5], 4294967168 }
 0x145   :  { %245 = vsyncpa [#allocation4], 1 }
 0x146   :  { %246 = vsyncpa [#allocation7], 1 }
 0x147   :  { %247 = vsyncpa [#allocation5], 1 }

</bundles_post_ra>
